<compile_context>
chip_gen: v5e
topology: v5e:2x2
jax: 0.10.0
libtpu: 0.0.40
codegen_flags: <defaults>
</compile_context>

<pallas_src>
import functools
import math

import jax
import jax.numpy as jnp
from jax import lax
from jax.experimental import pallas as pl
from jax.experimental.pallas import tpu as pltpu

EPS = 1e-6          # config.layer_norm_eps
NEG_INF = -1e30     # finite "masked" logit (stays f32 -> no overflow / NaN)

# Row indices of the packed per-channel slab for kernel 1 (each row is (1, C)).
(_G1, _B1, _BQ, _BK, _BV, _QG, _QB, _KG, _KB) = range(9)
# Row indices of the packed per-channel slab for kernel 2.
(_2G1, _2B1, _BO, _BC, _G2, _B2, _BB2) = range(7)


def _layernorm(x, gamma, beta):
    # PyTorch nn.LayerNorm: biased variance, eps inside sqrt.
    mean = jnp.mean(x, axis=-1, keepdims=True)
    var = jnp.mean((x - mean) ** 2, axis=-1, keepdims=True)
    return (x - mean) * lax.rsqrt(var + EPS) * gamma + beta


# --------------------------- kernel 1: row projections ---------------------------
def _qkv_kernel(x_ref, vec_ref, wq_ref, wk_ref, wv_ref,
                q_ref, k_ref, v_ref, *, mxu_dtype):
    x = x_ref[...]                           # (TM, C) f32
    vec = vec_ref[...]                       # (9, C) f32

    def row(i):
        return vec[i:i + 1, :]               # (1, C), broadcasts over rows

    h = _layernorm(x, row(_G1), row(_B1))    # norm1 (normalize_before=True)
    hm = h.astype(mxu_dtype)

    q = jnp.dot(hm, wq_ref[...], preferred_element_type=jnp.float32) + row(_BQ)
    k = jnp.dot(hm, wk_ref[...], preferred_element_type=jnp.float32) + row(_BK)
    v = jnp.dot(hm, wv_ref[...], preferred_element_type=jnp.float32) + row(_BV)

    # qk_normalization over embed_dim.  NOTE: the 1/sqrt(head_dim) attention
    # scale is pre-folded into the q-norm affine params (wrapper side).
    q = _layernorm(q, row(_QG), row(_QB))
    k = _layernorm(k, row(_KG), row(_KB))

    q_ref[...] = q.astype(q_ref.dtype)
    k_ref[...] = k.astype(k_ref.dtype)
    v_ref[...] = v.astype(v_ref.dtype)


# ------------------- kernel 2: flash attention + concat + FFN --------------------
def _flash_layer_kernel(x_ref, qc_ref, kc_ref, vh_ref, mb_ref,
                        vec_ref, bb1_ref,
                        wo_ref, wca_ref, wcb_ref, w1_ref, w2_ref,
                        out_ref,
                        m_s, l_s, acc_s,
                        *, num_heads, head_dim, mxu_dtype, approx_recip):
    H, D = num_heads, head_dim
    ki = pl.program_id(2)
    nk = pl.num_programs(2)

    @pl.when(ki == 0)
    def _():
        m_s[...] = jnp.full(m_s.shape, NEG_INF, jnp.float32)
        l_s[...] = jnp.zeros(l_s.shape, jnp.float32)
        acc_s[...] = jnp.zeros(acc_s.shape, jnp.float32)

    # Fused content+position logits: contract K = 2D per head, batched over H.
    qc = qc_ref[0]                           # (H, TQ, 2D) mxu_dtype
    kc = kc_ref[0]                           # (H, TK, 2D) mxu_dtype
    dn_qk = (((2,), (2,)), ((0,), (0,)))     # (H,TQ,2D) x (H,TK,2D) -> (H,TQ,TK)
    logits = lax.dot_general(qc, kc, dn_qk, preferred_element_type=jnp.float32)
    logits = logits + mb_ref[0]              # additive key-mask bias (1, TK)

    # Online softmax update (keys tiled over the "arbitrary" grid axis).
    m_prev = m_s[...]                                        # (H, TQ)
    m_new = jnp.maximum(m_prev, jnp.max(logits, axis=-1))
    alpha = jnp.exp(m_prev - m_new)
    p = jnp.exp(logits - m_new[:, :, None])                  # (H, TQ, TK)
    l_s[...] = alpha * l_s[...] + jnp.sum(p, axis=-1)
    dn_pv = (((2,), (1,)), ((0,), (0,)))     # (H,TQ,TK) x (H,TK,D) -> (H,TQ,D)
    acc_s[...] = alpha[:, :, None] * acc_s[...] + lax.dot_general(
        p.astype(mxu_dtype), vh_ref[0], dn_pv,
        preferred_element_type=jnp.float32)
    m_s[...] = m_new

    @pl.when(ki == nk - 1)
    def _():
        vec = vec_ref[...]                   # (7, C) f32

        def row(i):
            return vec[i:i + 1, :]

        if approx_recip:                      # bf16 path: EUP reciprocal is plenty
            o = acc_s[...] * pl.reciprocal(l_s[...], approx=True)[:, :, None]
        else:                                 # f32 path: exact division
            o = acc_s[...] / l_s[...][:, :, None]            # (H, TQ, D)

        # Assemble (TQ, C) head-concatenated output, then ONE K=C matmul vs Wo.
        attn_cat = jnp.concatenate([o[hh] for hh in range(H)], axis=-1)
        attn_out = jnp.dot(attn_cat.astype(mxu_dtype), wo_ref[...],
                           preferred_element_type=jnp.float32) + row(_BO)

        x = x_ref[0]                          # (TQ, C) f32 residual
        h1 = _layernorm(x, row(_2G1), row(_2B1))             # recompute norm1(x)

        # concat_after: cat([h1, attn]) @ Wc == h1 @ Wc[:C] + attn @ Wc[C:]
        h2 = (jnp.dot(h1.astype(mxu_dtype), wca_ref[...],
                      preferred_element_type=jnp.float32)
              + jnp.dot(attn_out.astype(mxu_dtype), wcb_ref[...],
                        preferred_element_type=jnp.float32)
              + row(_BC) + x)

        # feed-forward block
        h3 = _layernorm(h2, row(_G2), row(_B2))              # norm2
        ff = jnp.dot(h3.astype(mxu_dtype), w1_ref[...],
                     preferred_element_type=jnp.float32) + bb1_ref[...]
        ff = jnp.maximum(ff, 0.0)                            # relu
        ff = jnp.dot(ff.astype(mxu_dtype), w2_ref[...],
                     preferred_element_type=jnp.float32) + row(_BB2)
        out_ref[0] = (ff + h2).astype(out_ref.dtype)
    # TODO(synk): dropout / attention_dropout are 0.0 in this config -> identity.


# ------------------------------------ wrapper ------------------------------------
def whale_audio_encoder_layer(x, mask, pos, params, num_heads,
                              mxu_dtype=jnp.bfloat16, out_dtype=jnp.float32):
    B, N, C = x.shape
    H = num_heads
    D = C // H
    I = params['w1'].shape[1]
    scale = 1.0 / math.sqrt(D)
    approx_recip = jnp.dtype(mxu_dtype) == jnp.dtype(jnp.bfloat16)

    def _round_up(a, m):
        return (a + m - 1) // m * m

    # Pad the sequence so query/key tiles divide evenly; padded keys get a
    # -1e30 additive mask, padded query rows are sliced off at the end.
    T = min(128, _round_up(N, 8))            # query/key tile (rows per step)
    Np = _round_up(N, T)
    x_p = jnp.pad(x.astype(jnp.float32), ((0, 0), (0, Np - N), (0, 0)))
    pos_p = jnp.pad(pos.astype(jnp.float32), ((0, 0), (0, Np - N), (0, 0)))
    mask_p = jnp.pad(mask, ((0, 0), (0, 0), (0, Np - N)))    # pad=0 -> masked
    mask_bias = jnp.where(mask_p > 0.0, 0.0, NEG_INF).astype(jnp.float32)

    # ---------------- kernel 1: row-tiled norm1 + Q/K/V projections ----------------
    M = B * Np
    x_flat = x_p.reshape(M, C)
    vec1 = jnp.concatenate([
        params['g1'], params['b1'],
        params['bq'], params['bk'], params['bv'],
        params['qg'] * scale, params['qb'] * scale,       # attention scale folded
        params['kg'], params['kb'],
    ], axis=0).astype(jnp.float32)                         # (9, C)
    wq = params['wq'].astype(mxu_dtype)
    wk = params['wk'].astype(mxu_dtype)
    wv = params['wv'].astype(mxu_dtype)

    TM = min(512, M)
    q, k, v = pl.pallas_call(
        functools.partial(_qkv_kernel, mxu_dtype=mxu_dtype),
        out_shape=[jax.ShapeDtypeStruct((M, C), mxu_dtype)] * 3,
        grid=(pl.cdiv(M, TM),),
        in_specs=[
            pl.BlockSpec((TM, C), lambda i: (i, 0)),          # x rows
            pl.BlockSpec(vec1.shape, lambda i: (0, 0)),       # packed vectors
            pl.BlockSpec((C, C), lambda i: (0, 0)),           # Wq
            pl.BlockSpec((C, C), lambda i: (0, 0)),           # Wk
            pl.BlockSpec((C, C), lambda i: (0, 0)),           # Wv
        ],
        out_specs=[pl.BlockSpec((TM, C), lambda i: (i, 0))] * 3,
        compiler_params=pltpu.CompilerParams(
            dimension_semantics=("parallel",),
            vmem_limit_bytes=64 * 1024 * 1024),
    )(x_flat, vec1, wq, wk, wv)

    # ------------- wrapper layout work (batch-invariant / layout-only XLA) -------------
    def to_heads(t):                                         # (M,C)->(B,H,Np,D)
        return t.reshape(B, Np, H, D).transpose(0, 2, 1, 3)

    qh = to_heads(q).astype(jnp.float32)
    kh = to_heads(k)
    vh = to_heads(v)                                         # (B,H,Np,D) mxu_dtype

    pbu = (params['pbu'] * scale).reshape(1, H, 1, D)        # scale folded
    pbv = (params['pbv'] * scale).reshape(1, H, 1, D)
    qc = jnp.concatenate([qh + pbu, qh + pbv], axis=-1).astype(mxu_dtype)

    p_pe = pos_p[0] @ params['wp']                           # (Np, C) batch-invariant
    ph = p_pe.reshape(Np, H, D).transpose(1, 0, 2)           # (H, Np, D)
    ph_b = jnp.broadcast_to(ph[None].astype(mxu_dtype), (B, H, Np, D))
    kc = jnp.concatenate([kh, ph_b], axis=-1)                # (B,H,Np,2D)

    # ---------------- kernel 2: flash attention + concat-linear + FFN ----------------
    vec2 = jnp.concatenate([
        params['g1'], params['b1'],
        params['bo'], params['bc'],
        params['g2'], params['b2'], params['bb2'],
    ], axis=0).astype(jnp.float32)                           # (7, C)
    bb1 = params['bb1'].astype(jnp.float32)                  # (1, I)
    wo = params['wo'].astype(mxu_dtype)
    wca = params['wc'][:C].astype(mxu_dtype)                 # concat-linear, norm1(x) part
    wcb = params['wc'][C:].astype(mxu_dtype)                 # concat-linear, attn part
    w1 = params['w1'].astype(mxu_dtype)
    w2 = params['w2'].astype(mxu_dtype)

    TQ = TK = T
    kernel2 = functools.partial(
        _flash_layer_kernel, num_heads=H, head_dim=D,
        mxu_dtype=mxu_dtype, approx_recip=bool(approx_recip))

    out_p = pl.pallas_call(
        kernel2,
        out_shape=jax.ShapeDtypeStruct((B, Np, C), out_dtype),
        grid=(B, Np // TQ, Np // TK),
        in_specs=[
            pl.BlockSpec((1, TQ, C), lambda b, qi, ki: (b, qi, 0)),          # x (residual)
            pl.BlockSpec((1, H, TQ, 2 * D), lambda b, qi, ki: (b, 0, qi, 0)),  # qc
            pl.BlockSpec((1, H, TK, 2 * D), lambda b, qi, ki: (b, 0, ki, 0)),  # kc
            pl.BlockSpec((1, H, TK, D), lambda b, qi, ki: (b, 0, ki, 0)),      # v heads
            pl.BlockSpec((1, 1, TK), lambda b, qi, ki: (b, 0, ki)),            # mask bias
            pl.BlockSpec(vec2.shape, lambda b, qi, ki: (0, 0)),
            pl.BlockSpec(bb1.shape, lambda b, qi, ki: (0, 0)),
            pl.BlockSpec((C, C), lambda b, qi, ki: (0, 0)),                    # Wo
            pl.BlockSpec((C, C), lambda b, qi, ki: (0, 0)),                    # Wc[:C]
            pl.BlockSpec((C, C), lambda b, qi, ki: (0, 0)),                    # Wc[C:]
            pl.BlockSpec((C, I), lambda b, qi, ki: (0, 0)),                    # W1
            pl.BlockSpec((I, C), lambda b, qi, ki: (0, 0)),                    # W2
        ],
        out_specs=pl.BlockSpec((1, TQ, C), lambda b, qi, ki: (b, qi, 0)),
        scratch_shapes=[
            pltpu.VMEM((H, TQ), jnp.float32),       # running max m
            pltpu.VMEM((H, TQ), jnp.float32),       # running denom l
            pltpu.VMEM((H, TQ, D), jnp.float32),    # running numerator acc
        ],
        compiler_params=pltpu.CompilerParams(
            dimension_semantics=("parallel", "parallel", "arbitrary"),
            vmem_limit_bytes=64 * 1024 * 1024),
    )(x_p, qc, kc, vh, mask_bias, vec2, bb1, wo, wca, wcb, w1, w2)

    return out_p[:, :N, :]


# ------------------------------- pure-JAX reference -------------------------------
def reference(x, mask, pos, p, num_heads):
    B, N, C = x.shape
    D = C // num_heads

    def ln(v, g, b):
        m = v.mean(-1, keepdims=True)
        var = ((v - m) ** 2).mean(-1, keepdims=True)
        return (v - m) / jnp.sqrt(var + EPS) * g + b

    residual = x
    h = ln(x, p['g1'], p['b1'])
    q = h @ p['wq'] + p['bq']
    k = h @ p['wk'] + p['bk']
    v = h @ p['wv'] + p['bv']
    q = ln(q, p['qg'], p['qb'])
    k = ln(k, p['kg'], p['kb'])
    pe = pos @ p['wp']                                  # (1, N, C)

    def to_heads(t):                                    # (B,N,C)->(B,H,N,D)
        return t.reshape(t.shape[0], t.shape[1], num_heads, D).transpose(0, 2, 1, 3)

    qh, kh, vh = to_heads(q), to_heads(k), to_heads(v)
    ph = to_heads(pe)[0]                                # (H, N, D)
    pbu = p['pbu'].reshape(1, num_heads, 1, D)
    pbv = p['pbv'].reshape(1, num_heads, 1, D)
    ac = jnp.einsum('bhnd,bhmd->bhnm', qh + pbu, kh)
    bd = jnp.einsum('bhnd,hmd->bhnm', qh + pbv, ph)
    attn = (ac + bd) * (D ** -0.5)
    attn = jnp.where(mask[:, :, None, :] > 0, attn, -jnp.inf)
    attn = jax.nn.softmax(attn, axis=-1)
    ao = jnp.einsum('bhnm,bhmd->bhnd', attn, vh).transpose(0, 2, 1, 3).reshape(B, N, C)
    ao = ao @ p['wo'] + p['bo']
    cat = jnp.concatenate([h, ao], axis=-1)
    h2 = cat @ p['wc'] + p['bc'] + residual
    r2 = h2
    h3 = ln(h2, p['g2'], p['b2'])
    ff = jnp.maximum(h3 @ p['w1'] + p['bb1'], 0.0) @ p['w2'] + p['bb2']
    return ff + r2


def init_params(key, C, I):
    names_shapes = {
        'g1': (1, C), 'b1': (1, C),
        'wq': (C, C), 'bq': (1, C), 'wk': (C, C), 'bk': (1, C),
        'wv': (C, C), 'bv': (1, C),
        'qg': (1, C), 'qb': (1, C), 'kg': (1, C), 'kb': (1, C),
        'wp': (C, C), 'pbu': (1, C), 'pbv': (1, C),
        'wo': (C, C), 'bo': (1, C),
        'wc': (2 * C, C), 'bc': (1, C),
        'g2': (1, C), 'b2': (1, C),
        'w1': (C, I), 'bb1': (1, I), 'w2': (I, C), 'bb2': (1, C),
    }
    params = {}
    keys = jax.random.split(key, len(names_shapes))
    for kk, (name, shape) in zip(keys, names_shapes.items()):
        if name in ('g1', 'g2', 'qg', 'kg'):
            params[name] = jnp.ones(shape, jnp.float32) + \
                0.05 * jax.random.normal(kk, shape, jnp.float32)
        else:
            params[name] = 0.02 * jax.random.normal(kk, shape, jnp.float32)
    return params


if __name__ == "__main__":
    B, N, C, H, I = 2, 8, 128, 4, 256     # batch, seq, hidden, heads, intermediate

    key = jax.random.PRNGKey(0)
    k_x, k_pos, k_par = jax.random.split(key, 3)

    x = jax.random.normal(k_x, (B, N, C), jnp.float32)
    pos = jax.random.normal(k_pos, (1, N, C), jnp.float32)
    mask = jnp.ones((B, 1, N), jnp.float32)
    mask = mask.at[1, 0, N - 2:].set(0.0)  # mask last two keys of batch 1

    params = init_params(k_par, C, I)
    ref = reference(x, mask, pos, params, H)

    # f32 MXU path (strict accuracy check)
    out = whale_audio_encoder_layer(x, mask, pos, params, H,
                                    mxu_dtype=jnp.float32)
    out = jax.block_until_ready(out)
    assert out.shape == (B, N, C)
    assert jnp.allclose(out, ref, atol=2e-3, rtol=2e-3), \
        f"f32 max err {jnp.max(jnp.abs(out - ref))}"

    # bf16 MXU path (recommended default on v5e/v6e/v7x; f32 accumulate,
    # f32 LayerNorm/softmax)
    out_bf16 = whale_audio_encoder_layer(x, mask, pos, params, H,
                                         mxu_dtype=jnp.bfloat16)
    out_bf16 = jax.block_until_ready(out_bf16)
    assert jnp.allclose(out_bf16, ref, atol=5e-2, rtol=5e-2), \
        f"bf16 max err {jnp.max(jnp.abs(out_bf16 - ref))}"

    print("KERNEL_OK")
</pallas_src>

<mosaic_0001>
module attributes {stable_mosaic.version = 11 : i64} {
  func.func @_qkv_kernel(%arg0: i32, %arg1: memref<16x128xf32, #tpu.memory_space<vmem>>, %arg2: memref<9x128xf32, #tpu.memory_space<vmem>>, %arg3: memref<128x128xf32, #tpu.memory_space<vmem>>, %arg4: memref<128x128xf32, #tpu.memory_space<vmem>>, %arg5: memref<128x128xf32, #tpu.memory_space<vmem>>, %arg6: memref<16x128xf32, #tpu.memory_space<vmem>>, %arg7: memref<16x128xf32, #tpu.memory_space<vmem>>, %arg8: memref<16x128xf32, #tpu.memory_space<vmem>>) attributes {dimension_semantics = [#tpu.dimension_semantics<parallel>], iteration_bounds = array<i64: 1>, scalar_prefetch = 0 : i64, scratch_operands = 0 : i64, tpu.core_type = #tpu.core_type<tc>, window_params = [{transform_indices = @transform_0, window_bounds = array<i64: 16, 128>}, {pipeline_mode = #tpu.pipeline_mode<synchronous>, transform_indices = @transform_1, window_bounds = array<i64: 9, 128>}, {pipeline_mode = #tpu.pipeline_mode<synchronous>, transform_indices = @transform_2, window_bounds = array<i64: 128, 128>}, {pipeline_mode = #tpu.pipeline_mode<synchronous>, transform_indices = @transform_3, window_bounds = array<i64: 128, 128>}, {pipeline_mode = #tpu.pipeline_mode<synchronous>, transform_indices = @transform_4, window_bounds = array<i64: 128, 128>}, {transform_indices = @transform_5, window_bounds = array<i64: 16, 128>}, {transform_indices = @transform_6, window_bounds = array<i64: 16, 128>}, {transform_indices = @transform_7, window_bounds = array<i64: 16, 128>}]} {
    %c0 = arith.constant 0 : index
    %c0_0 = arith.constant 0 : index
    %0 = vector.load %arg1[%c0, %c0_0] : memref<16x128xf32, #tpu.memory_space<vmem>>, vector<16x128xf32>
    %c0_1 = arith.constant 0 : index
    %c0_2 = arith.constant 0 : index
    %1 = vector.load %arg2[%c0_1, %c0_2] : memref<9x128xf32, #tpu.memory_space<vmem>>, vector<9x128xf32>
    %2 = vector.extract_strided_slice %1 {offsets = [0, 0], sizes = [1, 128], strides = [1, 1]} : vector<9x128xf32> to vector<1x128xf32>
    %3 = vector.extract_strided_slice %1 {offsets = [1, 0], sizes = [1, 128], strides = [1, 1]} : vector<9x128xf32> to vector<1x128xf32>
    %cst = arith.constant dense<0.000000e+00> : vector<16xf32>
    %4 = vector.multi_reduction <add>, %0, %cst [1] : vector<16x128xf32> to vector<16xf32>
    %5 = vector.shape_cast %4 : vector<16xf32> to vector<16x1xf32>
    %cst_3 = arith.constant 1.280000e+02 : f32
    %6 = vector.broadcast %cst_3 : f32 to vector<16x1xf32>
    %7 = arith.divf %5, %6 : vector<16x1xf32>
    %8 = vector.broadcast %7 : vector<16x1xf32> to vector<16x128xf32>
    %9 = arith.subf %0, %8 : vector<16x128xf32>
    %10 = arith.mulf %9, %9 : vector<16x128xf32>
    %cst_4 = arith.constant dense<0.000000e+00> : vector<16xf32>
    %11 = vector.multi_reduction <add>, %10, %cst_4 [1] : vector<16x128xf32> to vector<16xf32>
    %12 = vector.shape_cast %11 : vector<16xf32> to vector<16x1xf32>
    %cst_5 = arith.constant 1.280000e+02 : f32
    %13 = vector.broadcast %cst_5 : f32 to vector<16x1xf32>
    %14 = arith.divf %12, %13 : vector<16x1xf32>
    %15 = vector.broadcast %7 : vector<16x1xf32> to vector<16x128xf32>
    %16 = arith.subf %0, %15 : vector<16x128xf32>
    %cst_6 = arith.constant 9.99999997E-7 : f32
    %17 = vector.broadcast %cst_6 : f32 to vector<16x1xf32>
    %18 = arith.addf %14, %17 : vector<16x1xf32>
    %19 = math.rsqrt %18 : vector<16x1xf32>
    %20 = vector.broadcast %19 : vector<16x1xf32> to vector<16x128xf32>
    %21 = arith.mulf %16, %20 : vector<16x128xf32>
    %22 = vector.broadcast %2 : vector<1x128xf32> to vector<16x128xf32>
    %23 = arith.mulf %21, %22 : vector<16x128xf32>
    %24 = vector.broadcast %3 : vector<1x128xf32> to vector<16x128xf32>
    %25 = arith.addf %23, %24 : vector<16x128xf32>
    %c0_7 = arith.constant 0 : index
    %c0_8 = arith.constant 0 : index
    %26 = vector.load %arg3[%c0_7, %c0_8] : memref<128x128xf32, #tpu.memory_space<vmem>>, vector<128x128xf32>
    %cst_9 = arith.constant dense<0.000000e+00> : vector<16x128xf32>
    %27 = tpu.matmul %25, %26, %cst_9 {dimension_numbers = #tpu.dot_dimension_numbers<[1], [0], [0], [1], [0, 0, 1, 1], [], []>} : vector<16x128xf32>, vector<128x128xf32>, vector<16x128xf32> -> vector<16x128xf32>
    %28 = vector.extract_strided_slice %1 {offsets = [2, 0], sizes = [1, 128], strides = [1, 1]} : vector<9x128xf32> to vector<1x128xf32>
    %29 = vector.broadcast %28 : vector<1x128xf32> to vector<16x128xf32>
    %30 = arith.addf %27, %29 : vector<16x128xf32>
    %c0_10 = arith.constant 0 : index
    %c0_11 = arith.constant 0 : index
    %31 = vector.load %arg4[%c0_10, %c0_11] : memref<128x128xf32, #tpu.memory_space<vmem>>, vector<128x128xf32>
    %cst_12 = arith.constant dense<0.000000e+00> : vector<16x128xf32>
    %32 = tpu.matmul %25, %31, %cst_12 {dimension_numbers = #tpu.dot_dimension_numbers<[1], [0], [0], [1], [0, 0, 1, 1], [], []>} : vector<16x128xf32>, vector<128x128xf32>, vector<16x128xf32> -> vector<16x128xf32>
    %33 = vector.extract_strided_slice %1 {offsets = [3, 0], sizes = [1, 128], strides = [1, 1]} : vector<9x128xf32> to vector<1x128xf32>
    %34 = vector.broadcast %33 : vector<1x128xf32> to vector<16x128xf32>
    %35 = arith.addf %32, %34 : vector<16x128xf32>
    %c0_13 = arith.constant 0 : index
    %c0_14 = arith.constant 0 : index
    %36 = vector.load %arg5[%c0_13, %c0_14] : memref<128x128xf32, #tpu.memory_space<vmem>>, vector<128x128xf32>
    %cst_15 = arith.constant dense<0.000000e+00> : vector<16x128xf32>
    %37 = tpu.matmul %25, %36, %cst_15 {dimension_numbers = #tpu.dot_dimension_numbers<[1], [0], [0], [1], [0, 0, 1, 1], [], []>} : vector<16x128xf32>, vector<128x128xf32>, vector<16x128xf32> -> vector<16x128xf32>
    %38 = vector.extract_strided_slice %1 {offsets = [4, 0], sizes = [1, 128], strides = [1, 1]} : vector<9x128xf32> to vector<1x128xf32>
    %39 = vector.broadcast %38 : vector<1x128xf32> to vector<16x128xf32>
    %40 = arith.addf %37, %39 : vector<16x128xf32>
    %41 = vector.extract_strided_slice %1 {offsets = [5, 0], sizes = [1, 128], strides = [1, 1]} : vector<9x128xf32> to vector<1x128xf32>
    %42 = vector.extract_strided_slice %1 {offsets = [6, 0], sizes = [1, 128], strides = [1, 1]} : vector<9x128xf32> to vector<1x128xf32>
    %cst_16 = arith.constant dense<0.000000e+00> : vector<16xf32>
    %43 = vector.multi_reduction <add>, %30, %cst_16 [1] : vector<16x128xf32> to vector<16xf32>
    %44 = vector.shape_cast %43 : vector<16xf32> to vector<16x1xf32>
    %cst_17 = arith.constant 1.280000e+02 : f32
    %45 = vector.broadcast %cst_17 : f32 to vector<16x1xf32>
    %46 = arith.divf %44, %45 : vector<16x1xf32>
    %47 = vector.broadcast %46 : vector<16x1xf32> to vector<16x128xf32>
    %48 = arith.subf %30, %47 : vector<16x128xf32>
    %49 = arith.mulf %48, %48 : vector<16x128xf32>
    %cst_18 = arith.constant dense<0.000000e+00> : vector<16xf32>
    %50 = vector.multi_reduction <add>, %49, %cst_18 [1] : vector<16x128xf32> to vector<16xf32>
    %51 = vector.shape_cast %50 : vector<16xf32> to vector<16x1xf32>
    %cst_19 = arith.constant 1.280000e+02 : f32
    %52 = vector.broadcast %cst_19 : f32 to vector<16x1xf32>
    %53 = arith.divf %51, %52 : vector<16x1xf32>
    %54 = vector.broadcast %46 : vector<16x1xf32> to vector<16x128xf32>
    %55 = arith.subf %30, %54 : vector<16x128xf32>
    %cst_20 = arith.constant 9.99999997E-7 : f32
    %56 = vector.broadcast %cst_20 : f32 to vector<16x1xf32>
    %57 = arith.addf %53, %56 : vector<16x1xf32>
    %58 = math.rsqrt %57 : vector<16x1xf32>
    %59 = vector.broadcast %58 : vector<16x1xf32> to vector<16x128xf32>
    %60 = arith.mulf %55, %59 : vector<16x128xf32>
    %61 = vector.broadcast %41 : vector<1x128xf32> to vector<16x128xf32>
    %62 = arith.mulf %60, %61 : vector<16x128xf32>
    %63 = vector.broadcast %42 : vector<1x128xf32> to vector<16x128xf32>
    %64 = arith.addf %62, %63 : vector<16x128xf32>
    %65 = vector.extract_strided_slice %1 {offsets = [7, 0], sizes = [1, 128], strides = [1, 1]} : vector<9x128xf32> to vector<1x128xf32>
    %66 = vector.extract_strided_slice %1 {offsets = [8, 0], sizes = [1, 128], strides = [1, 1]} : vector<9x128xf32> to vector<1x128xf32>
    %cst_21 = arith.constant dense<0.000000e+00> : vector<16xf32>
    %67 = vector.multi_reduction <add>, %35, %cst_21 [1] : vector<16x128xf32> to vector<16xf32>
    %68 = vector.shape_cast %67 : vector<16xf32> to vector<16x1xf32>
    %cst_22 = arith.constant 1.280000e+02 : f32
    %69 = vector.broadcast %cst_22 : f32 to vector<16x1xf32>
    %70 = arith.divf %68, %69 : vector<16x1xf32>
    %71 = vector.broadcast %70 : vector<16x1xf32> to vector<16x128xf32>
    %72 = arith.subf %35, %71 : vector<16x128xf32>
    %73 = arith.mulf %72, %72 : vector<16x128xf32>
    %cst_23 = arith.constant dense<0.000000e+00> : vector<16xf32>
    %74 = vector.multi_reduction <add>, %73, %cst_23 [1] : vector<16x128xf32> to vector<16xf32>
    %75 = vector.shape_cast %74 : vector<16xf32> to vector<16x1xf32>
    %cst_24 = arith.constant 1.280000e+02 : f32
    %76 = vector.broadcast %cst_24 : f32 to vector<16x1xf32>
    %77 = arith.divf %75, %76 : vector<16x1xf32>
    %78 = vector.broadcast %70 : vector<16x1xf32> to vector<16x128xf32>
    %79 = arith.subf %35, %78 : vector<16x128xf32>
    %cst_25 = arith.constant 9.99999997E-7 : f32
    %80 = vector.broadcast %cst_25 : f32 to vector<16x1xf32>
    %81 = arith.addf %77, %80 : vector<16x1xf32>
    %82 = math.rsqrt %81 : vector<16x1xf32>
    %83 = vector.broadcast %82 : vector<16x1xf32> to vector<16x128xf32>
    %84 = arith.mulf %79, %83 : vector<16x128xf32>
    %85 = vector.broadcast %65 : vector<1x128xf32> to vector<16x128xf32>
    %86 = arith.mulf %84, %85 : vector<16x128xf32>
    %87 = vector.broadcast %66 : vector<1x128xf32> to vector<16x128xf32>
    %88 = arith.addf %86, %87 : vector<16x128xf32>
    %c0_26 = arith.constant 0 : index
    %c0_27 = arith.constant 0 : index
    %89 = vector.load %arg6[%c0_26, %c0_27] : memref<16x128xf32, #tpu.memory_space<vmem>>, vector<16x128xf32>
    tpu.vector_store %arg6[%c0_26, %c0_27], %64 {strides = array<i32>} : memref<16x128xf32, #tpu.memory_space<vmem>>, vector<16x128xf32>,
    %c0_28 = arith.constant 0 : index
    %c0_29 = arith.constant 0 : index
    %90 = vector.load %arg7[%c0_28, %c0_29] : memref<16x128xf32, #tpu.memory_space<vmem>>, vector<16x128xf32>
    tpu.vector_store %arg7[%c0_28, %c0_29], %88 {strides = array<i32>} : memref<16x128xf32, #tpu.memory_space<vmem>>, vector<16x128xf32>,
    %c0_30 = arith.constant 0 : index
    %c0_31 = arith.constant 0 : index
    %91 = vector.load %arg8[%c0_30, %c0_31] : memref<16x128xf32, #tpu.memory_space<vmem>>, vector<16x128xf32>
    tpu.vector_store %arg8[%c0_30, %c0_31], %40 {strides = array<i32>} : memref<16x128xf32, #tpu.memory_space<vmem>>, vector<16x128xf32>,
    return
  }
  func.func @transform_0(%arg0: i32) -> (i32, i32) {
    %c0_i32 = arith.constant 0 : i32
    %c0_i32_0 = arith.constant 0 : i32
    return %arg0, %c0_i32 : i32, i32
  }
  func.func @transform_1(%arg0: i32) -> (i32, i32) {
    %c0_i32 = arith.constant 0 : i32
    %c0_i32_0 = arith.constant 0 : i32
    %c0_i32_1 = arith.constant 0 : i32
    return %c0_i32, %c0_i32_0 : i32, i32
  }
  func.func @transform_2(%arg0: i32) -> (i32, i32) {
    %c0_i32 = arith.constant 0 : i32
    %c0_i32_0 = arith.constant 0 : i32
    %c0_i32_1 = arith.constant 0 : i32
    return %c0_i32, %c0_i32_0 : i32, i32
  }
  func.func @transform_3(%arg0: i32) -> (i32, i32) {
    %c0_i32 = arith.constant 0 : i32
    %c0_i32_0 = arith.constant 0 : i32
    %c0_i32_1 = arith.constant 0 : i32
    return %c0_i32, %c0_i32_0 : i32, i32
  }
  func.func @transform_4(%arg0: i32) -> (i32, i32) {
    %c0_i32 = arith.constant 0 : i32
    %c0_i32_0 = arith.constant 0 : i32
    %c0_i32_1 = arith.constant 0 : i32
    return %c0_i32, %c0_i32_0 : i32, i32
  }
  func.func @transform_5(%arg0: i32) -> (i32, i32) {
    %c0_i32 = arith.constant 0 : i32
    %c0_i32_0 = arith.constant 0 : i32
    return %arg0, %c0_i32 : i32, i32
  }
  func.func @transform_6(%arg0: i32) -> (i32, i32) {
    %c0_i32 = arith.constant 0 : i32
    %c0_i32_0 = arith.constant 0 : i32
    return %arg0, %c0_i32 : i32, i32
  }
  func.func @transform_7(%arg0: i32) -> (i32, i32) {
    %c0_i32 = arith.constant 0 : i32
    %c0_i32_0 = arith.constant 0 : i32
    return %arg0, %c0_i32 : i32, i32
  }
}

</mosaic_0001>

<bundles_post_ra>
// kernel: tpu_custom_call.1
= control target key start
LH: loop header
LB: loop body
LE: loop exit
PB: predicated region body
PF: predicated region fallthrough
CT: control target
= control target key end

     0   :  { %13 = vsyncpa [#allocation3], 0  ;;  %s821_s0 = inlined_call_operand.hbm [shape: f32[16,128], index: 0, kind: input, shape index: {}]   ;;  %s822_s1 = inlined_call_operand.hbm [shape: f32[9,128], index: 1, kind: input, shape index: {}]   ;;  %s823_s2 = inlined_call_operand.hbm [shape: f32[128,128], index: 2, kind: input, shape index: {}]   ;;  %s824_s3 = inlined_call_operand.hbm [shape: f32[128,128], index: 3, kind: input, shape index: {}]   ;;  %s825_s4 = inlined_call_operand.hbm [shape: f32[128,128], index: 4, kind: input, shape index: {}]   ;;  %s826_s5 = inlined_call_operand.hbm [shape: f32[16,128], index: 5, kind: output, shape index: {0}]   ;;  %s827_s6 = inlined_call_operand.hbm [shape: f32[16,128], index: 6, kind: output, shape index: {1}]   ;;  %s828_s7 = inlined_call_operand.hbm [shape: f32[16,128], index: 7, kind: output, shape index: {2}]  }
   0x1   :  { %14 = vsyncpa [#allocation6], 0 }
   0x2   :  { %15 = vsyncpa [#allocation9], 0 }
   0x3   :  { %16 = vsyncpa [#allocation4], 0 }
   0x4   :  { %17 = vsyncpa [#allocation13], 0  ;;  %s35_s26 = sshll.u32 %s822_s1, 4  ;;  %s678_s27 = smov [#allocation5]   ;;  %s36_s26 = int_to_ptr.hbm [resolvable:$true] %s35_s26 }
   0x5   :  { %s37_s28 = sshll.u32 %s678_s27, 4  ;;  %s61_s8 = sshll.u32 %s824_s3, 4  ;;  %s38_s28 = int_to_ptr.vmem [resolvable:$true] %s37_s28  ;;  %s62_s8 = int_to_ptr.hbm [resolvable:$true] %s61_s8 }
   0x6   :  { %s679_s9 = smov 128   ;;  %s680_s10 = smov 8  }
   0x7   :  { %43 = dma.hbm_to_vmem [thread:$0]  %s36_s26, 256, %s38_s28, [#allocation6], %s679_s9, %s679_s9, %s680_s10  }
   0x8   :  { %s681_s11 = smov [#allocation8]   ;;  %s22_s1 = sshll.u32 %s821_s0, 4  ;;  %s23_s1 = int_to_ptr.hbm [resolvable:$true] %s22_s1 }
   0x9   :  { %s63_s12 = sshll.u32 %s681_s11, 4  ;;  %s48_s16 = sshll.u32 %s823_s2, 4  ;;  %s64_s12 = int_to_ptr.vmem [resolvable:$true] %s63_s12  ;;  %s49_s16 = int_to_ptr.hbm [resolvable:$true] %s48_s16 }
   0xa   :  { %69 = dma.hbm_to_vmem [thread:$0]  %s62_s8, 2048, %s64_s12, [#allocation9], %s679_s9, %s679_s9, %s680_s10  }
   0xb   :  { %s682_s17 = smov [#allocation2]   ;;  %s683_s19 = smov [#allocation7]  }
   0xc   :  { %s24_s18 = sshll.u32 %s682_s17, 4  ;;  %s50_s0 = sshll.u32 %s683_s19, 4  ;;  %s25_s18 = int_to_ptr.vmem [resolvable:$true] %s24_s18  ;;  %s51_s0 = int_to_ptr.vmem [resolvable:$true] %s50_s0 }
   0xd   :  { %30 = dma.hbm_to_vmem [thread:$0]  %s23_s1, 256, %s25_s18, [#allocation3], %s679_s9, %s679_s9, %s680_s10  }
   0xe   :  { %s74_s22 = sshll.u32 %s825_s4, 4  ;;  %s684_s2 = smov [#allocation10]   ;;  %s75_s22 = int_to_ptr.hbm [resolvable:$true] %s74_s22 }
   0xf   :  { %56 = dma.hbm_to_vmem [thread:$0]  %s49_s16, 2048, %s51_s0, [#allocation6], %s679_s9, %s679_s9, %s680_s10  }
  0x10   :  { %s76_s23 = sshll.u32 %s684_s2, 4  ;;  %s77_s23 = int_to_ptr.vmem [resolvable:$true] %s76_s23 }
  0x11   :  { %82 = dma.hbm_to_vmem [thread:$0]  %s75_s22, 2048, %s77_s23, [#allocation9], %s679_s9, %s679_s9, %s680_s10  }
  0x12   :  { %668 = dma.done.wait [#allocation3], 256  }
  0x13   :  { %669 = vsyncadd [#allocation3], 4294967040 }
  0x14   :  { %670 = dma.done.wait [#allocation6], 2304  }
  0x15   :  { %671 = vsyncadd [#allocation6], 4294964992 }
  0x16   :  { %672 = dma.done.wait [#allocation9], 4096  }
  0x17   :  { %673 = vsyncadd [#allocation9], 4294963200  ;;  %v103_v0 = vld [vmem:[#allocation2] sm:$0xff]  ;;  %v104_v1 = vld [vmem:[#allocation2 + $0x8] sm:$0xff]  ;;  %v685_v2 = vmov 128.0   ;;  %s686_s4 = smov [#allocation12]  }
  0x18   :  { %107 = vadd.xlane.f32.xlu0 %v103_v0  ;;  %462 = vrcp.f32 %v685_v2  ;;  %v175_v5 = vld [vmem:[#allocation7 + $0x78] sm:$0xff]  ;;  %v174_v8 = vld [vmem:[#allocation7 + $0x70] sm:$0xff]  ;;  %v173_v23 = vld [vmem:[#allocation7 + $0x68] sm:$0xff]  ;;  %s395_s24 = sshll.u32 %s686_s4, 4  ;;  %s397_s27 = sshll.u32 %s827_s6, 4  ;;  %s396_s24 = int_to_ptr.vmem [resolvable:$true] %s395_s24  ;;  %s398_s27 = int_to_ptr.hbm [resolvable:$true] %s397_s27 }
  0x19   :  { %v215_v6 = vld [vmem:[#allocation8 + $0x78] sm:$0xff]  ;;  %177 = vmatpush.msra.mxu0 %v175_v5  ;;  %v214_v9 = vld [vmem:[#allocation8 + $0x70] sm:$0xff]  ;;  %434 = vmatpush.msra.mxu3 %v175_v5  ;;  %v213_v24 = vld [vmem:[#allocation8 + $0x68] sm:$0xff]  ;;  %s687_s28 = smov [#allocation14]   ;;  %s410_s11 = sshll.u32 %s828_s7, 4  ;;  %s411_s11 = int_to_ptr.hbm [resolvable:$true] %s410_s11 }
  0x1a   :  { %v255_v7 = vld [vmem:[#allocation10 + $0x78] sm:$0xff]  ;;  %217 = vmatpush.msra.mxu1 %v215_v6  ;;  %v254_v10 = vld [vmem:[#allocation10 + $0x70] sm:$0xff]  ;;  %v253_v25 = vld [vmem:[#allocation10 + $0x68] sm:$0xff]  ;;  %s408_s29 = sshll.u32 %s687_s28, 4  ;;  %s688_s6 = smov [#allocation11]   ;;  %s409_s29 = int_to_ptr.vmem [resolvable:$true] %s408_s29 }
  0x1b   :  { %257 = vmatpush.msra.mxu2 %v255_v7  ;;  %178 = vmatpush.msra.mxu0 %v174_v8  ;;  %v172_v26 = vld [vmem:[#allocation7 + $0x60] sm:$0xff]  ;;  %v171_v29 = vld [vmem:[#allocation7 + $0x58] sm:$0xff]  ;;  %v170_v32 = vld [vmem:[#allocation7 + $0x50] sm:$0xff]  ;;  %s382_s12 = sshll.u32 %s688_s6, 4  ;;  %s384_s1 = sshll.u32 %s826_s5, 4  ;;  %s383_s12 = int_to_ptr.vmem [resolvable:$true] %s382_s12  ;;  %s385_s1 = int_to_ptr.hbm [resolvable:$true] %s384_s1 }
  0x1c   :  { %218 = vmatpush.msra.mxu1 %v214_v9  ;;  %435 = vmatpush.msra.mxu3 %v174_v8  ;;  %v212_v27 = vld [vmem:[#allocation8 + $0x60] sm:$0xff]  ;;  %v211_v30 = vld [vmem:[#allocation8 + $0x58] sm:$0xff]  ;;  %v210_v33 = vld [vmem:[#allocation8 + $0x50] sm:$0xff] }
  0x1d   :  { %258 = vmatpush.msra.mxu2 %v254_v10  ;;  %179 = vmatpush.msra.mxu0 %v173_v23  ;;  %v252_v28 = vld [vmem:[#allocation10 + $0x60] sm:$0xff]  ;;  %v251_v31 = vld [vmem:[#allocation10 + $0x58] sm:$0xff]  ;;  %v250_v34 = vld [vmem:[#allocation10 + $0x50] sm:$0xff] }
  0x1e   :  { %v463_v3 = vpop.eup %462  ;;  %219 = vmatpush.msra.mxu1 %v213_v24  ;;  %436 = vmatpush.msra.mxu3 %v173_v23  ;;  %v169_v35 = vld [vmem:[#allocation7 + $0x48] sm:$0xff]  ;;  %v168_v38 = vld [vmem:[#allocation7 + $0x40] sm:$0xff]  ;;  %v167_v41 = vld [vmem:[#allocation7 + $0x38] sm:$0xff] }
  0x1f   :  { %v112_v4 = vmul.f32 128.0, %v463_v3  ;;  %vm116_vm0 = vweird.f32 %v463_v3  ;;  %259 = vmatpush.msra.mxu2 %v253_v25  ;;  %180 = vmatpush.msra.mxu0 %v172_v26  ;;  %v209_v36 = vld [vmem:[#allocation8 + $0x48] sm:$0xff]  ;;  %v208_v39 = vld [vmem:[#allocation8 + $0x40] sm:$0xff]  ;;  %v207_v42 = vld [vmem:[#allocation8 + $0x38] sm:$0xff] }
  0x20   :  { %109 = vadd.xlane.f32.xlu0 %v104_v1  ;;  %220 = vmatpush.msra.mxu1 %v212_v27  ;;  %v249_v37 = vld [vmem:[#allocation10 + $0x48] sm:$0xff]  ;;  %v248_v40 = vld [vmem:[#allocation10 + $0x40] sm:$0xff]  ;;  %v247_v43 = vld [vmem:[#allocation10 + $0x38] sm:$0xff] }
  0x21   :  { %v113_v11 = vsub.f32 1.0, %v112_v4  ;;  %260 = vmatpush.msra.mxu2 %v252_v28  ;;  %437 = vmatpush.msra.mxu3 %v172_v26  ;;  %v166_v44 = vld [vmem:[#allocation7 + $0x30] sm:$0xff]  ;;  %v165_v47 = vld [vmem:[#allocation7 + $0x28] sm:$0xff]  ;;  %v164_v50 = vld [vmem:[#allocation7 + $0x20] sm:$0xff] }
  0x22   :  { %181 = vmatpush.msra.mxu0 %v171_v29  ;;  %221 = vmatpush.msra.mxu1 %v211_v30  ;;  %v206_v45 = vld [vmem:[#allocation8 + $0x30] sm:$0xff]  ;;  %v205_v48 = vld [vmem:[#allocation8 + $0x28] sm:$0xff]  ;;  %v204_v51 = vld [vmem:[#allocation8 + $0x20] sm:$0xff] }
  0x23   :  { %v114_v12 = vmul.f32 %v463_v3, %v113_v11  ;;  %261 = vmatpush.msra.mxu2 %v251_v31  ;;  %438 = vmatpush.msra.mxu3 %v171_v29  ;;  %v246_v46 = vld [vmem:[#allocation10 + $0x30] sm:$0xff]  ;;  %v245_v49 = vld [vmem:[#allocation10 + $0x28] sm:$0xff]  ;;  %v244_v52 = vld [vmem:[#allocation10 + $0x20] sm:$0xff] }
  0x24   :  { %182 = vmatpush.msra.mxu0 %v170_v32  ;;  %222 = vmatpush.msra.mxu1 %v210_v33  ;;  %v163_v53 = vld [vmem:[#allocation7 + $0x18] sm:$0xff]  ;;  %v162_v56 = vld [vmem:[#allocation7 + $0x10] sm:$0xff]  ;;  %v161_v59 = vld [vmem:[#allocation7 + $0x8] sm:$0xff] }
  0x25   :  { %v115_v13 = vadd.f32 %v463_v3, %v114_v12  ;;  %262 = vmatpush.msra.mxu2 %v250_v34  ;;  %439 = vmatpush.msra.mxu3 %v170_v32  ;;  %v203_v54 = vld [vmem:[#allocation8 + $0x18] sm:$0xff]  ;;  %v202_v57 = vld [vmem:[#allocation8 + $0x10] sm:$0xff]  ;;  %v201_v60 = vld [vmem:[#allocation8 + $0x8] sm:$0xff] }
  0x26   :  { %183 = vmatpush.msra.mxu0 %v169_v35  ;;  %223 = vmatpush.msra.mxu1 %v209_v36  ;;  %v243_v55 = vld [vmem:[#allocation10 + $0x18] sm:$0xff]  ;;  %v242_v58 = vld [vmem:[#allocation10 + $0x10] sm:$0xff]  ;;  %v241_v61 = vld [vmem:[#allocation10 + $0x8] sm:$0xff] }
  0x27   :  { %v759_v14 = vsel %vm116_vm0, %v463_v3, %v115_v13  ;;  %263 = vmatpush.msra.mxu2 %v249_v37  ;;  %440 = vmatpush.msra.mxu3 %v169_v35  ;;  %v160_v62 = vld [vmem:[#allocation7] sm:$0xff]  ;;  %v773_v12 = vld [vmem:[#allocation5] sm:$0xff] }
  0x28   :  { %184 = vmatpush.msra.mxu0 %v168_v38  ;;  %224 = vmatpush.msra.mxu1 %v208_v39  ;;  %v200_v63 = vld [vmem:[#allocation8] sm:$0xff]  ;;  %v157_v23 = vperm.slane %v773_v12, 1  ;;  %v216_v33 = vperm.slane %v773_v12, 3 }
  0x29   :  { %264 = vmatpush.msra.mxu2 %v248_v40  ;;  %441 = vmatpush.msra.mxu3 %v168_v38  ;;  %v256_v38 = vperm.slane %v773_v12, 4 }
  0x2a   :  { %185 = vmatpush.msra.mxu0 %v167_v41  ;;  %225 = vmatpush.msra.mxu1 %v207_v42 }
  0x2b   :  { %265 = vmatpush.msra.mxu2 %v247_v43  ;;  %442 = vmatpush.msra.mxu3 %v167_v41 }
  0x2c   :  { %186 = vmatpush.msra.mxu0 %v166_v44  ;;  %226 = vmatpush.msra.mxu1 %v206_v45 }
  0x2d   :  { %266 = vmatpush.msra.mxu2 %v246_v46  ;;  %443 = vmatpush.msra.mxu3 %v166_v44 }
  0x2e   :  { %187 = vmatpush.msra.mxu0 %v165_v47  ;;  %227 = vmatpush.msra.mxu1 %v205_v48 }
  0x2f   :  { %267 = vmatpush.msra.mxu2 %v245_v49  ;;  %444 = vmatpush.msra.mxu3 %v165_v47 }
  0x30   :  { %188 = vmatpush.msra.mxu0 %v164_v50  ;;  %228 = vmatpush.msra.mxu1 %v204_v51 }
  0x31   :  { %268 = vmatpush.msra.mxu2 %v244_v52  ;;  %445 = vmatpush.msra.mxu3 %v164_v50 }
  0x32   :  { %189 = vmatpush.msra.mxu0 %v163_v53  ;;  %229 = vmatpush.msra.mxu1 %v203_v54 }
  0x33   :  { %269 = vmatpush.msra.mxu2 %v243_v55  ;;  %446 = vmatpush.msra.mxu3 %v163_v53 }
  0x34   :  { %190 = vmatpush.msra.mxu0 %v162_v56  ;;  %230 = vmatpush.msra.mxu1 %v202_v57 }
  0x35   :  { %270 = vmatpush.msra.mxu2 %v242_v58  ;;  %447 = vmatpush.msra.mxu3 %v162_v56 }
  0x36   :  { %191 = vmatpush.msra.mxu0 %v161_v59  ;;  %231 = vmatpush.msra.mxu1 %v201_v60 }
  0x37   :  { %271 = vmatpush.msra.mxu2 %v241_v61  ;;  %448 = vmatpush.msra.mxu3 %v161_v59 }
  0x38   :  { %192 = vmatpush.msra.mxu0 %v160_v62  ;;  %232 = vmatpush.msra.mxu1 %v200_v63 }
  0x39   :  { %449 = vmatpush.msra.mxu3 %v160_v62 }
  0x8b   :  { %v108_v15 = vpop.xlane.xlu0 %107 }
  0x8c   :  { %v118_v16 = vmul.f32 %v759_v14, %v108_v15 }
  0x8e   :  { %v762_v17 = vsub.f32 %v103_v0, %v118_v16  ;;  %v240_v0 = vld [vmem:[#allocation10] sm:$0xff] }
  0x8f   :  { %272 = vmatpush.msra.mxu2 %v240_v0 }
  0x90   :  { %v122_v18 = vmul.f32 %v762_v17, %v762_v17 }
  0x92   :  { %124 = vadd.xlane.f32.xlu1 %v122_v18  ;;  %v154_v18 = vperm.slane %v773_v12, 0 }
  0x93   :  { %v110_v19 = vpop.xlane.xlu0 %109 }
  0x94   :  { %v119_v20 = vmul.f32 %v759_v14, %v110_v19 }
  0x96   :  { %v767_v21 = vsub.f32 %v104_v1, %v119_v20 }
  0x98   :  { %v123_v22 = vmul.f32 %v767_v21, %v767_v21 }
  0x9a   :  { %126 = vadd.xlane.f32.xlu1 %v123_v22 }
 0x105   :  { %v125_v1 = vpop.xlane.xlu1 %124 }
 0x106   :  { %v128_v2 = vmul.f32 %v125_v1, %v759_v14 }
 0x108   :  { %v130_v3 = vadd.f32 1e-06, %v128_v2 }
 0x10a   :  { %464 = vrsqrt.f32 %v130_v3  ;;  %vm138_vm2 = vweird.f32 %v130_v3 }
 0x10d   :  { %v127_v4 = vpop.xlane.xlu1 %126 }
 0x10e   :  { %v129_v5 = vmul.f32 %v127_v4, %v759_v14 }
 0x110   :  { %v465_v6 = vpop.eup %464  ;;  %v131_v7 = vadd.f32 1e-06, %v129_v5 }
 0x111   :  { %v133_v8 = vmul.f32 %v465_v6, %v130_v3  ;;  %vm139_vm1 = vweird.f32 %v465_v6 }
 0x112   :  { %466 = vrsqrt.f32 %v131_v7  ;;  %vm140_vm3 = vmor %vm138_vm2, %vm139_vm1  ;;  %vm148_vm5 = vweird.f32 %v131_v7 }
 0x113   :  { %v134_v9 = vmul.f32 %v465_v6, %v133_v8 }
 0x115   :  { %v135_v10 = vmul.f32 0.5, %v134_v9 }
 0x117   :  { %v136_v11 = vsub.f32 1.5, %v135_v10 }
 0x118   :  { %v467_v13 = vpop.eup %466 }
 0x119   :  { %v137_v15 = vmul.f32 %v465_v6, %v136_v11  ;;  %v143_v16 = vmul.f32 %v467_v13, %v131_v7  ;;  %vm149_vm4 = vweird.f32 %v467_v13 }
 0x11a   :  { %vm150_vm6 = vmor %vm148_vm5, %vm149_vm4 }
 0x11b   :  { %v141_v19 = vsel %vm140_vm3, %v465_v6, %v137_v15  ;;  %v144_v20 = vmul.f32 %v467_v13, %v143_v16 }
 0x11c   :  { %v152_v22 = vmul.f32 %v141_v19, %v762_v17  ;;  %v176_v17 = vperm.slane %v773_v12, 2 }
 0x11d   :  { %v145_v24 = vmul.f32 0.5, %v144_v20 }
 0x11e   :  { %v155_v25 = vmul.f32 %v154_v18, %v152_v22 }
 0x11f   :  { %v146_v26 = vsub.f32 1.5, %v145_v24 }
 0x120   :  { %v158_v27 = vadd.f32 %v157_v23, %v155_v25 }
 0x121   :  { %v147_v28 = vmul.f32 %v467_v13, %v146_v26 }
 0x122   :  { %193 = vmatmul.f32.vlgmr.msra.gmra.mxu0 %v158_v27  ;;  %233 = vmatmul.f32.vlgmr.msra.gmra.mxu1 %v158_v27 }
 0x123   :  { %v151_v29 = vsel %vm150_vm6, %v467_v13, %v147_v28  ;;  %273 = vmatmul.f32.vlgmr.msra.gmra.mxu2 %v158_v27  ;;  %v366_v28 = vperm.slane %v773_v12, 7 }
 0x124   :  { %v153_v30 = vmul.f32 %v151_v29, %v767_v21 }
 0x126   :  { %v156_v31 = vmul.f32 %v154_v18, %v153_v30  ;;  %v320_v30 = vperm.slane %v773_v12, 5 }
 0x128   :  { %v159_v32 = vadd.f32 %v157_v23, %v156_v31 }
 0x12a   :  { %196 = vmatmul.f32.vlgmr.msra.gmra.mxu3 %v159_v32  ;;  %236 = vmatmul.f32.gmra.mxu1 %v159_v32 }
 0x12b   :  { %276 = vmatmul.f32.gmra.mxu2 %v159_v32 }
 0x19f   :  { %v194_v34 = vpop.f32.mrf.mxu0  ;;  %v234_v35 = vpop.f32.mrf.mxu1 }
 0x1a0   :  { %v195_v36 = vadd.f32 %v194_v34, %v176_v17  ;;  %v235_v37 = vadd.f32 %v234_v35, %v216_v33  ;;  %v323_v35 = vperm.slane %v773_v12, 6 }
 0x1a2   :  { %326 = vadd.xlane.f32.xlu2 %v235_v37  ;;  %280 = vadd.xlane.f32.xlu0 %v195_v36 }
 0x1a6   :  { %v274_v39 = vpop.f32.mrf.mxu2 }
 0x1a7   :  { %v275_v40 = vadd.f32 %v274_v39, %v256_v38  ;;  %v237_v21 = vpop.f32.mrf.mxu1 }
 0x1a8   :  { %v238_v41 = vadd.f32 %v237_v21, %v216_v33 }
 0x1a9   :  { %376 = vst [vmem:[#allocation14] sm:$0xff] %v275_v40 }
 0x1aa   :  { %328 = vadd.xlane.f32.xlu2 %v238_v41 }
 0x1ad   :  { %v197_v42 = vpop.f32.mrf.mxu3 }
 0x1ae   :  { %v198_v43 = vadd.f32 %v197_v42, %v176_v17  ;;  %v277_v44 = vpop.f32.mrf.mxu2  ;;  %v461_v17 = vld [vmem:[#allocation5 + $0x8] ss:$0 sm:$0xff] }
 0x1af   :  { %v278_v45 = vadd.f32 %v277_v44, %v256_v38 }
 0x1b0   :  { %282 = vadd.xlane.f32.xlu1 %v198_v43 }
 0x1b1   :  { %377 = vst [vmem:[#allocation14 + $0x8] sm:$0xff] %v278_v45 }
 0x215   :  { %v327_v46 = vpop.xlane.xlu2 %326  ;;  %v281_v47 = vpop.xlane.xlu0 %280 }
 0x216   :  { %v330_v48 = vmul.f32 %v327_v46, %v759_v14  ;;  %v284_v49 = vmul.f32 %v281_v47, %v759_v14 }
 0x218   :  { %v332_v50 = vsub.f32 %v235_v37, %v330_v48  ;;  %v286_v51 = vsub.f32 %v195_v36, %v284_v49 }
 0x21a   :  { %v334_v52 = vmul.f32 %v332_v50, %v332_v50  ;;  %v288_v53 = vmul.f32 %v286_v51, %v286_v51 }
 0x21c   :  { %336 = vadd.xlane.f32.xlu2 %v334_v52  ;;  %290 = vadd.xlane.f32.xlu1 %v288_v53 }
 0x21d   :  { %v329_v54 = vpop.xlane.xlu2 %328 }
 0x21e   :  { %v331_v55 = vmul.f32 %v329_v54, %v759_v14 }
 0x220   :  { %v785_v56 = vsub.f32 %v238_v41, %v331_v55 }
 0x222   :  { %v335_v57 = vmul.f32 %v785_v56, %v785_v56 }
 0x223   :  { %v283_v58 = vpop.xlane.xlu1 %282 }
 0x224   :  { %v285_v59 = vmul.f32 %v283_v58, %v759_v14  ;;  %338 = vadd.xlane.f32.xlu0 %v335_v57 }
 0x226   :  { %v790_v60 = vsub.f32 %v198_v43, %v285_v59 }
 0x228   :  { %v289_v61 = vmul.f32 %v790_v60, %v790_v60 }
 0x22a   :  { %292 = vadd.xlane.f32.xlu2 %v289_v61 }
 0x28f   :  { %v337_v62 = vpop.xlane.xlu2 %336  ;;  %v291_v63 = vpop.xlane.xlu1 %290 }
 0x290   :  { %v340_v0 = vmul.f32 %v337_v62, %v759_v14  ;;  %v294_v1 = vmul.f32 %v291_v63, %v759_v14 }
 0x292   :  { %v342_v2 = vadd.f32 1e-06, %v340_v0  ;;  %v296_v3 = vadd.f32 1e-06, %v294_v1 }
 0x294   :  { %468 = vrsqrt.f32 %v342_v2  ;;  %vm350_vm9 = vweird.f32 %v342_v2  ;;  %vm304_vm11 = vweird.f32 %v296_v3 }
 0x295   :  { %470 = vrsqrt.f32 %v296_v3 }
 0x297   :  { %v339_v4 = vpop.xlane.xlu0 %338 }
 0x298   :  { %v341_v5 = vmul.f32 %v339_v4, %v759_v14 }
 0x29a   :  { %v469_v6 = vpop.eup %468  ;;  %v343_v7 = vadd.f32 1e-06, %v341_v5 }
 0x29b   :  { %v471_v8 = vpop.eup %470  ;;  %v345_v9 = vmul.f32 %v469_v6, %v342_v2  ;;  %vm351_vm7 = vweird.f32 %v469_v6 }
 0x29c   :  { %v299_v10 = vmul.f32 %v471_v8, %v296_v3  ;;  %472 = vrsqrt.f32 %v343_v7  ;;  %vm305_vm8 = vweird.f32 %v471_v8  ;;  %vm352_vm10 = vmor %vm350_vm9, %vm351_vm7  ;;  %vm360_vm14 = vweird.f32 %v343_v7 }
 0x29d   :  { %v346_v11 = vmul.f32 %v469_v6, %v345_v9  ;;  %v293_v13 = vpop.xlane.xlu2 %292  ;;  %vm306_vm12 = vmor %vm304_vm11, %vm305_vm8 }
 0x29e   :  { %v300_v15 = vmul.f32 %v471_v8, %v299_v10  ;;  %v295_v16 = vmul.f32 %v293_v13, %v759_v14 }
 0x29f   :  { %v347_v18 = vmul.f32 0.5, %v346_v11 }
 0x2a0   :  { %v301_v19 = vmul.f32 0.5, %v300_v15  ;;  %v297_v20 = vadd.f32 1e-06, %v295_v16 }
 0x2a1   :  { %v348_v22 = vsub.f32 1.5, %v347_v18 }
 0x2a2   :  { %v473_v23 = vpop.eup %472  ;;  %v302_v24 = vsub.f32 1.5, %v301_v19  ;;  %474 = vrsqrt.f32 %v297_v20  ;;  %vm314_vm1 = vweird.f32 %v297_v20 }
 0x2a3   :  { %v349_v25 = vmul.f32 %v469_v6, %v348_v22  ;;  %v355_v26 = vmul.f32 %v473_v23, %v343_v7  ;;  %vm361_vm13 = vweird.f32 %v473_v23 }
 0x2a4   :  { %v303_v27 = vmul.f32 %v471_v8, %v302_v24  ;;  %vm362_vm15 = vmor %vm360_vm14, %vm361_vm13 }
 0x2a5   :  { %v353_v29 = vsel %vm352_vm10, %v469_v6, %v349_v25  ;;  %v356_v14 = vmul.f32 %v473_v23, %v355_v26 }
 0x2a6   :  { %v364_v31 = vmul.f32 %v353_v29, %v332_v50  ;;  %v307_v32 = vsel %vm306_vm12, %v471_v8, %v303_v27 }
 0x2a7   :  { %v318_v33 = vmul.f32 %v307_v32, %v286_v51  ;;  %v357_v34 = vmul.f32 0.5, %v356_v14 }
 0x2a8   :  { %v475_v36 = vpop.eup %474  ;;  %v367_v37 = vmul.f32 %v366_v28, %v364_v31 }
 0x2a9   :  { %v358_v38 = vsub.f32 1.5, %v357_v34  ;;  %v309_v39 = vmul.f32 %v475_v36, %v297_v20  ;;  %v321_v40 = vmul.f32 %v320_v30, %v318_v33  ;;  %vm315_vm0 = vweird.f32 %v475_v36 }
 0x2aa   :  { %v370_v21 = vadd.f32 %v461_v17, %v367_v37  ;;  %vm316_vm2 = vmor %vm314_vm1, %vm315_vm0 }
 0x2ab   :  { %v359_v41 = vmul.f32 %v473_v23, %v358_v38  ;;  %v310_v42 = vmul.f32 %v475_v36, %v309_v39  ;;  %v324_v43 = vadd.f32 %v323_v35, %v321_v40 }
 0x2ac   :  { %374 = vst [vmem:[#allocation12] sm:$0xff] %v370_v21 }
 0x2ad   :  { %v363_v44 = vsel %vm362_vm15, %v473_v23, %v359_v41  ;;  %v311_v45 = vmul.f32 0.5, %v310_v42  ;;  %372 = vst [vmem:[#allocation11] sm:$0xff] %v324_v43 }
 0x2ae   :  { %v365_v46 = vmul.f32 %v363_v44, %v785_v56 }
 0x2af   :  { %v312_v47 = vsub.f32 1.5, %v311_v45 }
 0x2b0   :  { %v368_v12 = vmul.f32 %v366_v28, %v365_v46 }
 0x2b1   :  { %v313_v48 = vmul.f32 %v475_v36, %v312_v47 }
 0x2b2   :  { %v371_v49 = vadd.f32 %v461_v17, %v368_v12 }
 0x2b3   :  { %v317_v50 = vsel %vm316_vm2, %v475_v36, %v313_v48 }
 0x2b4   :  { %v319_v51 = vmul.f32 %v317_v50, %v790_v60  ;;  %375 = vst [vmem:[#allocation12 + $0x8] sm:$0xff] %v371_v49 }
 0x2b5   :  { %403 = dma.vmem_to_hbm [thread:$0]  %s396_s24, 256, %s398_s27, [#allocation13], %s679_s9, %s679_s9, %s680_s10  }
 0x2b6   :  { %v322_v52 = vmul.f32 %v320_v30, %v319_v51  ;;  %416 = dma.vmem_to_hbm [thread:$0]  %s409_s29, 256, %s411_s11, [#allocation13], %s679_s9, %s679_s9, %s680_s10  }
 0x2b8   :  { %v325_v53 = vadd.f32 %v323_v35, %v322_v52 }
 0x2ba   :  { %373 = vst [vmem:[#allocation11 + $0x8] sm:$0xff] %v325_v53 }
 0x2bb   :  { %390 = dma.vmem_to_hbm [thread:$0]  %s383_s12, 256, %s385_s1, [#allocation4], %s679_s9, %s679_s9, %s680_s10  }
 0x2bc   :  { %674 = dma.done.wait [#allocation4], 256  }
 0x2bd   :  { %675 = vsyncadd [#allocation4], 4294967040 }
 0x2be   :  { %676 = dma.done.wait [#allocation13], 512  }
 0x2bf   :  { %677 = vsyncadd [#allocation13], 4294966784 }
 0x2c0   :  { %429 = vsyncpa [#allocation3], 1 }
 0x2c1   :  { %430 = vsyncpa [#allocation6], 1 }
 0x2c2   :  { %431 = vsyncpa [#allocation9], 1 }
 0x2c3   :  { %432 = vsyncpa [#allocation4], 1 }
 0x2c4   :  { %433 = vsyncpa [#allocation13], 1 }

</bundles_post_ra>
